<compile_context>
chip_gen: v5e
topology: v5e:2x2
jax: 0.10.0
libtpu: 0.0.40
codegen_flags: <defaults>
</compile_context>

<pallas_src>
import jax
import jax.numpy as jnp
from jax.experimental import pallas as pl
from jax.experimental.pallas import tpu as pltpu

IN_FEATURES = 256
TARGET_TILE_BYTES = 4 * 1024 * 1024      # >= 4 MiB of input per grid step
VMEM_LIMIT_BYTES = 32 * 1024 * 1024      # explicit scoped-VMEM cap (OK on v5e/v6e/v7x)


def _round_up(n: int, m: int) -> int:
    return ((n + m - 1) // m) * m


def _sublane_multiple(dtype) -> int:
    # Sub-32-bit dtypes pack along sublanes: f32 -> 8, bf16 -> 16, int8/fp8 -> 32.
    return max(8, 32 // jnp.dtype(dtype).itemsize)


def _value_fc_kernel(x_ref, w_ref, b_ref, o_ref):
    # x_ref: (tile_b, 256) VMEM (native dtype)
    # w_ref: (256, 1)      VMEM (resident across grid steps)
    # b_ref: (1,)          SMEM f32 scalar
    # o_ref: (tile_b, 1)   f32
    acc = jnp.dot(x_ref[...], w_ref[...], preferred_element_type=jnp.float32)
    o_ref[...] = acc + b_ref[0]


def base_value_net_forward(x, w, b):
    """Forward pass matching BaseValueNet.forward.

    x: any shape (B, ...) with prod(...) == 256   (x.view(B, -1) in torch)
    w: (256, 1)  -- value_fc.weight.T
    b: (1,)      -- value_fc.bias
    returns: torch.squeeze(Linear(x)) semantics -> (B,) for B > 1, scalar for B == 1
    """
    batch = x.shape[0]
    x2d = x.reshape(batch, -1)                      # keep native dtype (bf16 OK)
    assert x2d.shape[1] == IN_FEATURES, x2d.shape   # trace-time shape check only

    w = w.astype(x2d.dtype)                         # tiny (256,1) cast for MXU dtype match
    b = b.reshape(1).astype(jnp.float32)            # scalar bias, added in f32

    itemsize = jnp.dtype(x2d.dtype).itemsize
    sub = _sublane_multiple(x2d.dtype)

    # Rows per step so that each step moves >= TARGET_TILE_BYTES of input.
    cap_rows = max(sub, (TARGET_TILE_BYTES // (IN_FEATURES * itemsize)) // sub * sub)
    # Keep >= 2 grid steps for large batches so "parallel" lands work on both v7x TCs.
    tile_b = min(cap_rows, _round_up(pl.cdiv(batch, 2), sub))
    num_tiles = pl.cdiv(batch, tile_b)              # ragged last block handled by Pallas

    cost = pl.CostEstimate(
        flops=2 * batch * IN_FEATURES,
        transcendentals=0,
        bytes_accessed=batch * IN_FEATURES * itemsize   # x read
        + IN_FEATURES * itemsize                        # weight read
        + batch * 4,                                    # f32 output write
    )

    out = pl.pallas_call(
        _value_fc_kernel,
        grid=(num_tiles,),
        out_shape=jax.ShapeDtypeStruct((batch, 1), jnp.float32),
        in_specs=[
            # x: pipelined (double-buffered) batch tiles.
            pl.BlockSpec((tile_b, IN_FEATURES), lambda i: (i, 0)),
            # w: constant block index -> resident in VMEM, fetched once.
            pl.BlockSpec((IN_FEATURES, 1), lambda i: (0, 0)),
            # b: scalar in SMEM (no padded VMEM tile / buffer pair).
            pl.BlockSpec(memory_space=pltpu.MemorySpace.SMEM),
        ],
        out_specs=pl.BlockSpec((tile_b, 1), lambda i: (i, 0)),
        compiler_params=pltpu.CompilerParams(
            dimension_semantics=("parallel",),      # shard batch tiles across v7x TCs
            vmem_limit_bytes=VMEM_LIMIT_BYTES,
        ),
        cost_estimate=cost,
    )(x2d, w, b)

    # torch.squeeze on (B, 1): (B,) for B > 1, 0-d scalar for B == 1.
    return jnp.squeeze(out)


if __name__ == "__main__":
    # Deterministic parameter init (shapes from nn.Linear(256, 1)).
    wkey, bkey, xkey, ykey = jax.random.split(jax.random.PRNGKey(0), 4)
    bound = 1.0 / jnp.sqrt(IN_FEATURES)
    # torch weight is (out=1, in=256); we store its transpose (256, 1).
    w = jax.random.uniform(wkey, (IN_FEATURES, 1), jnp.float32, -bound, bound)
    b = jax.random.uniform(bkey, (1,), jnp.float32, -bound, bound)

    # Small input consistent with the forward: batch=2, flattens to 256 features.
    x = jax.random.normal(xkey, (2, 4, 8, 8), jnp.float32)  # 4*8*8 = 256
    out = jax.block_until_ready(base_value_net_forward(x, w, b))
    ref = jnp.squeeze(x.reshape(x.shape[0], -1) @ w + b[None, :])
    assert out.shape == (2,), out.shape
    assert jnp.allclose(out, ref, atol=1e-5, rtol=1e-5)

    # Extra check: ragged batch (not a multiple of the tile) exercises the
    # no-pad / partial-last-block path with a multi-step grid.
    x2 = jax.random.normal(ykey, (50, IN_FEATURES), jnp.float32)
    out2 = jax.block_until_ready(base_value_net_forward(x2, w, b))
    ref2 = jnp.squeeze(x2 @ w + b[None, :])
    assert out2.shape == (50,), out2.shape
    assert jnp.allclose(out2, ref2, atol=1e-5, rtol=1e-5)

    print("KERNEL_OK")
</pallas_src>

<mosaic_0001>
module attributes {stable_mosaic.version = 11 : i64} {
  func.func @_value_fc_kernel(%arg0: i32, %arg1: memref<8x256xf32, #tpu.memory_space<vmem>>, %arg2: memref<256x1xf32, #tpu.memory_space<vmem>>, %arg3: memref<1xf32, #tpu.memory_space<smem>>, %arg4: memref<8x1xf32, #tpu.memory_space<vmem>>) attributes {dimension_semantics = [#tpu.dimension_semantics<parallel>], iteration_bounds = array<i64: 1>, scalar_prefetch = 0 : i64, scratch_operands = 0 : i64, tpu.core_type = #tpu.core_type<tc>, window_params = [{transform_indices = @transform_0, window_bounds = array<i64: 8, 256>}, {pipeline_mode = #tpu.pipeline_mode<synchronous>, transform_indices = @transform_1, window_bounds = array<i64: 256, 1>}, {transform_indices = @transform_2, window_bounds = array<i64: 1>}, {transform_indices = @transform_3, window_bounds = array<i64: 8, 1>}]} {
    %c0 = arith.constant 0 : index
    %c0_0 = arith.constant 0 : index
    %0 = vector.load %arg1[%c0, %c0_0] : memref<8x256xf32, #tpu.memory_space<vmem>>, vector<8x256xf32>
    %c0_1 = arith.constant 0 : index
    %c0_2 = arith.constant 0 : index
    %1 = vector.load %arg2[%c0_1, %c0_2] : memref<256x1xf32, #tpu.memory_space<vmem>>, vector<256x1xf32>
    %cst = arith.constant dense<0.000000e+00> : vector<8x1xf32>
    %2 = tpu.matmul %0, %1, %cst {dimension_numbers = #tpu.dot_dimension_numbers<[1], [0], [0], [1], [0, 0, 1, 1], [], []>} : vector<8x256xf32>, vector<256x1xf32>, vector<8x1xf32> -> vector<8x1xf32>
    %c0_3 = arith.constant 0 : index
    %3 = memref.load %arg3[%c0_3] : memref<1xf32, #tpu.memory_space<smem>>
    %4 = vector.broadcast %3 : f32 to vector<8x1xf32>
    %5 = arith.addf %2, %4 : vector<8x1xf32>
    %c0_4 = arith.constant 0 : index
    %c0_5 = arith.constant 0 : index
    %6 = vector.load %arg4[%c0_4, %c0_5] : memref<8x1xf32, #tpu.memory_space<vmem>>, vector<8x1xf32>
    tpu.vector_store %arg4[%c0_4, %c0_5], %5 {strides = array<i32>} : memref<8x1xf32, #tpu.memory_space<vmem>>, vector<8x1xf32>,
    return
  }
  func.func @transform_0(%arg0: i32) -> (i32, i32) {
    %c0_i32 = arith.constant 0 : i32
    %c0_i32_0 = arith.constant 0 : i32
    return %arg0, %c0_i32 : i32, i32
  }
  func.func @transform_1(%arg0: i32) -> (i32, i32) {
    %c0_i32 = arith.constant 0 : i32
    %c0_i32_0 = arith.constant 0 : i32
    %c0_i32_1 = arith.constant 0 : i32
    return %c0_i32, %c0_i32_0 : i32, i32
  }
  func.func @transform_2(%arg0: i32) -> i32 {
    %c0_i32 = arith.constant 0 : i32
    %c0_i32_0 = arith.constant 0 : i32
    return %c0_i32 : i32
  }
  func.func @transform_3(%arg0: i32) -> (i32, i32) {
    %c0_i32 = arith.constant 0 : i32
    %c0_i32_0 = arith.constant 0 : i32
    return %arg0, %c0_i32 : i32, i32
  }
}

</mosaic_0001>

<bundles_post_ra>
// kernel: tpu_custom_call.1
= control target key start
LH: loop header
LB: loop body
LE: loop exit
PB: predicated region body
PF: predicated region fallthrough
CT: control target
= control target key end

     0   :  { %vm108_vm0 = vcmask 7168   ;;  %s285_s0 = inlined_call_operand.vmem [shape: f32[2,256], index: 0, kind: input, shape index: {}]   ;;  %s286_s1 = inlined_call_operand.vmem [shape: f32[256,1], index: 1, kind: input, shape index: {}]   ;;  %s287_s2 = inlined_call_operand.<no memory space> [shape: f32[1], index: 2, kind: input, shape index: {}]   ;;  %s288_s3 = inlined_call_operand.vmem [shape: f32[2,1], index: 3, kind: output, shape index: {}]  }
   0x1   :  { %v34_v0 = vld [vmem:[%s286_s1 + $0x78] sm:$0xff]  ;;  %v33_v1 = vld [vmem:[%s286_s1 + $0x70] sm:$0xff]  ;;  %v32_v4 = vld [vmem:[%s286_s1 + $0x68] sm:$0xff]  ;;  %v52_v38 = vstv %s287_s2 }
   0x2   :  { %v50_v2 = vld [vmem:[%s286_s1 + $0xf8] sm:$0xff]  ;;  %68 = vmatpush.msra.mxu0 %v34_v0  ;;  %v49_v3 = vld [vmem:[%s286_s1 + $0xf0] sm:$0xff]  ;;  %v48_v5 = vld [vmem:[%s286_s1 + $0xe8] sm:$0xff] }
   0x3   :  { %88 = vmatpush.msra.mxu1 %v50_v2  ;;  %v31_v6 = vld [vmem:[%s286_s1 + $0x60] sm:$0xff]  ;;  %v30_v8 = vld [vmem:[%s286_s1 + $0x58] sm:$0xff]  ;;  %v29_v10 = vld [vmem:[%s286_s1 + $0x50] sm:$0xff] }
   0x4   :  { %69 = vmatpush.msra.mxu0 %v33_v1  ;;  %v47_v7 = vld [vmem:[%s286_s1 + $0xe0] sm:$0xff]  ;;  %v46_v9 = vld [vmem:[%s286_s1 + $0xd8] sm:$0xff]  ;;  %v45_v11 = vld [vmem:[%s286_s1 + $0xd0] sm:$0xff] }
   0x5   :  { %89 = vmatpush.msra.mxu1 %v49_v3  ;;  %v28_v12 = vld [vmem:[%s286_s1 + $0x48] sm:$0xff]  ;;  %v15_v14 = vld [vmem:[%s285_s0] sm:$0xf]  ;;  %v16_v15 = vld [vmem:[%s285_s0 + $0x4] sm:$0xf] }
   0x6   :  { %70 = vmatpush.msra.mxu0 %v32_v4  ;;  %v44_v13 = vld [vmem:[%s286_s1 + $0xc8] sm:$0xff]  ;;  %57 = vst [vmem:[#allocation1] ss:$4 sm:$0xff] %v15_v14  ;;  %v27_v18 = vld [vmem:[%s286_s1 + $0x40] sm:$0xff]  ;;  %v26_v20 = vld [vmem:[%s286_s1 + $0x38] sm:$0xff] }
   0x7   :  { %90 = vmatpush.msra.mxu1 %v48_v5  ;;  %v17_v16 = vld [vmem:[%s285_s0 + $0x8] sm:$0xf]  ;;  %v18_v17 = vld [vmem:[%s285_s0 + $0xc] sm:$0xf]  ;;  %v43_v19 = vld [vmem:[%s286_s1 + $0xc0] sm:$0xff] }
   0x8   :  { %71 = vmatpush.msra.mxu0 %v31_v6  ;;  %59 = vst [vmem:[#allocation1 + $0x1] ss:$4 sm:$0xff] %v16_v15  ;;  %v42_v21 = vld [vmem:[%s286_s1 + $0xb8] sm:$0xff]  ;;  %v25_v22 = vld [vmem:[%s286_s1 + $0x30] sm:$0xff]  ;;  %v24_v24 = vld [vmem:[%s286_s1 + $0x28] sm:$0xff] }
   0x9   :  { %91 = vmatpush.msra.mxu1 %v47_v7  ;;  %61 = vst [vmem:[#allocation1 + $0x2] ss:$4 sm:$0xff] %v17_v16  ;;  %v41_v23 = vld [vmem:[%s286_s1 + $0xb0] sm:$0xff]  ;;  %v40_v25 = vld [vmem:[%s286_s1 + $0xa8] sm:$0xff]  ;;  %v23_v26 = vld [vmem:[%s286_s1 + $0x20] sm:$0xff] }
   0xa   :  { %72 = vmatpush.msra.mxu0 %v30_v8  ;;  %63 = vst [vmem:[#allocation1 + $0x3] ss:$4 sm:$0xff] %v18_v17  ;;  %v39_v27 = vld [vmem:[%s286_s1 + $0xa0] sm:$0xff]  ;;  %v22_v28 = vld [vmem:[%s286_s1 + $0x18] sm:$0xff]  ;;  %v21_v30 = vld [vmem:[%s286_s1 + $0x10] sm:$0xff] }
   0xb   :  { %92 = vmatpush.msra.mxu1 %v46_v9  ;;  %v38_v29 = vld [vmem:[%s286_s1 + $0x98] sm:$0xff]  ;;  %v37_v31 = vld [vmem:[%s286_s1 + $0x90] sm:$0xff]  ;;  %v20_v32 = vld [vmem:[%s286_s1 + $0x8] sm:$0xff] }
   0xc   :  { %73 = vmatpush.msra.mxu0 %v29_v10  ;;  %v36_v33 = vld [vmem:[%s286_s1 + $0x88] sm:$0xff]  ;;  %v19_v34 = vld [vmem:[%s286_s1] sm:$0xff] }
   0xd   :  { %93 = vmatpush.msra.mxu1 %v45_v11  ;;  %v35_v35 = vld [vmem:[%s286_s1 + $0x80] sm:$0xff] }
   0xe   :  { %74 = vmatpush.msra.mxu0 %v28_v12 }
   0xf   :  { %94 = vmatpush.msra.mxu1 %v44_v13 }
  0x10   :  { %75 = vmatpush.msra.mxu0 %v27_v18 }
  0x11   :  { %95 = vmatpush.msra.mxu1 %v43_v19  ;;  %v64_v36 = vld.sshfl [vmem:[#allocation1] sm:$0xff pattern:$0x73625140]  ;;  %v65_v37 = vld.sshfl [vmem:[#allocation1 + $0x8] sm:$0xff pattern:$0x73625140] }
  0x12   :  { %76 = vmatpush.msra.mxu0 %v26_v20 }
  0x13   :  { %96 = vmatpush.msra.mxu1 %v42_v21 }
  0x14   :  { %77 = vmatpush.msra.mxu0 %v25_v22 }
  0x15   :  { %97 = vmatpush.msra.mxu1 %v41_v23 }
  0x16   :  { %78 = vmatpush.msra.mxu0 %v24_v24 }
  0x17   :  { %98 = vmatpush.msra.mxu1 %v40_v25 }
  0x18   :  { %79 = vmatpush.msra.mxu0 %v23_v26 }
  0x19   :  { %99 = vmatpush.msra.mxu1 %v39_v27 }
  0x1a   :  { %80 = vmatpush.msra.mxu0 %v22_v28 }
  0x1b   :  { %100 = vmatpush.msra.mxu1 %v38_v29 }
  0x1c   :  { %81 = vmatpush.msra.mxu0 %v21_v30 }
  0x1d   :  { %101 = vmatpush.msra.mxu1 %v37_v31 }
  0x1e   :  { %82 = vmatpush.msra.mxu0 %v20_v32 }
  0x1f   :  { %102 = vmatpush.msra.mxu1 %v36_v33 }
  0x20   :  { %83 = vmatpush.msra.mxu0 %v19_v34 }
  0x21   :  { %103 = vmatpush.msra.mxu1 %v35_v35  ;;  %84 = vmatmul.f32.vlgmr.msra.gmra.mxu0 %v64_v36 }
  0x22   :  { %104 = vmatmul.f32.vlgmr.msra.gmra.mxu1 %v65_v37 }
  0x9e   :  { %v85_v39 = vpop.f32.mrf.mxu0 }
  0x9f   :  { %v105_v40 = vpop.f32.mrf.mxu1  ;;  %v86_v41 = vadd.f32 %v85_v39, %v52_v38 }
  0xa1   :  { %v106_v42 = vadd.f32 %v105_v40, %v86_v41 }
  0xa3   :  { %109 = vst.msk [vmem:[#allocation3] sm:$0xff] %vm108_vm0, %v106_v42 }
  0xaa   :  { %v128_v43 = vld [vmem:[#allocation3] sm:$0x3] }
  0xab   :  { %129 = vst [vmem:[%s288_s3] sm:$0x3] %v128_v43 }

</bundles_post_ra>
